<compile_context>
chip_gen: v5e
topology: v5e:2x2
jax: 0.10.0
libtpu: 0.0.40
codegen_flags: <defaults>
</compile_context>

<pallas_src>
import jax
import jax.numpy as jnp
from jax.experimental import pallas as pl
from jax.experimental.pallas import tpu as pltpu


def mlp_kernel(x_ref, w1_ref, b1_ref, w2_ref, b2_ref, o_ref):
    x = x_ref[...]                     # (N, F)  f32
    w1 = w1_ref[...]                   # (F, H)  f32
    n_feature = x.shape[1]

    # Layer 1 on the VPU: K=F is tiny, so a statically-unrolled sum of
    # rank-1 broadcast FMAs beats pushing a K=2 matmul through the MXU.
    h = b1_ref[...]                    # (1, H), broadcasts up to (N, H)
    for k in range(n_feature):         # static unroll (F = 2)
        h = h + x[:, k:k + 1] * w1[k:k + 1, :]
    h = jnp.maximum(h, 0.0)            # ReLU

    # Layer 2 on the MXU: K=H=32, N padded to 128 lanes for a dense store.
    o = jnp.dot(h, w2_ref[...], preferred_element_type=jnp.float32) + b2_ref[...]
    o_ref[...] = o.astype(o_ref.dtype)


def net_forward(x, w1, b1, w2, b2, *, lane_pad=128):
    n, n_feature = x.shape
    n_hidden = w1.shape[1]
    n_output = w2.shape[1]

    # Lane-dense output: pad layer-2 params to a multiple of 128 output lanes
    # so the kernel's store is unmasked; slice the real columns off outside.
    n_pad = max(lane_pad, pl.cdiv(n_output, lane_pad) * lane_pad)
    w2p = jnp.pad(w2, ((0, 0), (0, n_pad - n_output)))
    b2p = jnp.pad(b2, ((0, 0), (0, n_pad - n_output)))

    vmem_spec = pl.BlockSpec(memory_space=pltpu.MemorySpace.VMEM)
    flops = 2 * n * (n_feature * n_hidden + n_hidden * n_pad)
    bytes_accessed = 4 * (x.size + w1.size + b1.size + w2p.size + b2p.size + n * n_pad)

    # TODO(synk): if the batch ever grows beyond toy scale, add a batch-tiled
    # grid (weights resident via index_map -> (0, 0), "parallel" semantics for
    # v7x's 2 TCs, tiles re-budgeted for 64 MiB VMEM on v7x).
    out = pl.pallas_call(
        mlp_kernel,
        out_shape=jax.ShapeDtypeStruct((n, n_pad), jnp.float32),
        in_specs=[vmem_spec] * 5,
        out_specs=vmem_spec,
        cost_estimate=pl.CostEstimate(
            flops=flops, transcendentals=0, bytes_accessed=bytes_accessed),
    )(x, w1, b1, w2p, b2p)
    return out[:, :n_output]


def init_linear(key, fan_in, fan_out):
    # Deterministic init mimicking PyTorch's default U(-1/sqrt(fan_in), 1/sqrt(fan_in)).
    kw, kb = jax.random.split(key)
    bound = 1.0 / jnp.sqrt(jnp.float32(fan_in))
    # stored as (in_features, out_features)  == PyTorch weight transposed
    w = jax.random.uniform(kw, (fan_in, fan_out), jnp.float32, -bound, bound)
    b = jax.random.uniform(kb, (1, fan_out), jnp.float32, -bound, bound)
    return w, b


def reference_forward(x, w1, b1, w2, b2):
    h = jnp.maximum(x @ w1 + b1, 0.0)
    return h @ w2 + b2


if __name__ == "__main__":
    key = jax.random.PRNGKey(0)
    k_x, k_l1, k_l2 = jax.random.split(key, 3)

    # Net(n_feature=2, n_hidden=32, n_output=2), small batch of 8 points.
    n_batch, n_feature, n_hidden, n_output = 8, 2, 32, 2

    # Synthetic classification-style input (two Gaussian blobs, as in the script).
    base = jnp.ones((n_batch // 2, n_feature), jnp.float32)
    noise = jax.random.normal(k_x, (n_batch, n_feature), jnp.float32)
    x = jnp.concatenate([2.0 * base, -2.0 * base], axis=0) + noise

    w1, b1 = init_linear(k_l1, n_feature, n_hidden)
    w2, b2 = init_linear(k_l2, n_hidden, n_output)

    out = net_forward(x, w1, b1, w2, b2)
    out = jax.block_until_ready(out)

    ref = reference_forward(x, w1, b1, w2, b2)
    assert out.shape == (n_batch, n_output)
    assert jnp.allclose(out, ref, atol=1e-5, rtol=1e-5)
    print("KERNEL_OK")
</pallas_src>

<mosaic_0001>
module attributes {stable_mosaic.version = 11 : i64} {
  func.func @mlp_kernel(%arg0: memref<8x2xf32, #tpu.memory_space<vmem>>, %arg1: memref<2x32xf32, #tpu.memory_space<vmem>>, %arg2: memref<1x32xf32, #tpu.memory_space<vmem>>, %arg3: memref<32x128xf32, #tpu.memory_space<vmem>>, %arg4: memref<1x128xf32, #tpu.memory_space<vmem>>, %arg5: memref<8x128xf32, #tpu.memory_space<vmem>>) attributes {dimension_semantics = [], scalar_prefetch = 0 : i64, scratch_operands = 0 : i64, tpu.core_type = #tpu.core_type<tc>} {
    %c0 = arith.constant 0 : index
    %c0_0 = arith.constant 0 : index
    %0 = vector.load %arg0[%c0, %c0_0] : memref<8x2xf32, #tpu.memory_space<vmem>>, vector<8x2xf32>
    %c0_1 = arith.constant 0 : index
    %c0_2 = arith.constant 0 : index
    %1 = vector.load %arg1[%c0_1, %c0_2] : memref<2x32xf32, #tpu.memory_space<vmem>>, vector<2x32xf32>
    %c0_3 = arith.constant 0 : index
    %c0_4 = arith.constant 0 : index
    %2 = vector.load %arg2[%c0_3, %c0_4] : memref<1x32xf32, #tpu.memory_space<vmem>>, vector<1x32xf32>
    %3 = vector.extract_strided_slice %0 {offsets = [0, 0], sizes = [8, 1], strides = [1, 1]} : vector<8x2xf32> to vector<8x1xf32>
    %4 = vector.extract_strided_slice %1 {offsets = [0, 0], sizes = [1, 32], strides = [1, 1]} : vector<2x32xf32> to vector<1x32xf32>
    %5 = vector.broadcast %3 : vector<8x1xf32> to vector<8x32xf32>
    %6 = vector.broadcast %4 : vector<1x32xf32> to vector<8x32xf32>
    %7 = arith.mulf %5, %6 : vector<8x32xf32>
    %8 = vector.broadcast %2 : vector<1x32xf32> to vector<8x32xf32>
    %9 = arith.addf %8, %7 : vector<8x32xf32>
    %10 = vector.extract_strided_slice %0 {offsets = [0, 1], sizes = [8, 1], strides = [1, 1]} : vector<8x2xf32> to vector<8x1xf32>
    %11 = vector.extract_strided_slice %1 {offsets = [1, 0], sizes = [1, 32], strides = [1, 1]} : vector<2x32xf32> to vector<1x32xf32>
    %12 = vector.broadcast %10 : vector<8x1xf32> to vector<8x32xf32>
    %13 = vector.broadcast %11 : vector<1x32xf32> to vector<8x32xf32>
    %14 = arith.mulf %12, %13 : vector<8x32xf32>
    %15 = arith.addf %9, %14 : vector<8x32xf32>
    %cst = arith.constant 0.000000e+00 : f32
    %16 = vector.broadcast %cst : f32 to vector<8x32xf32>
    %17 = arith.maximumf %15, %16 : vector<8x32xf32>
    %c0_5 = arith.constant 0 : index
    %c0_6 = arith.constant 0 : index
    %18 = vector.load %arg3[%c0_5, %c0_6] : memref<32x128xf32, #tpu.memory_space<vmem>>, vector<32x128xf32>
    %cst_7 = arith.constant dense<0.000000e+00> : vector<8x128xf32>
    %19 = tpu.matmul %17, %18, %cst_7 {dimension_numbers = #tpu.dot_dimension_numbers<[1], [0], [0], [1], [0, 0, 1, 1], [], []>} : vector<8x32xf32>, vector<32x128xf32>, vector<8x128xf32> -> vector<8x128xf32>
    %c0_8 = arith.constant 0 : index
    %c0_9 = arith.constant 0 : index
    %20 = vector.load %arg4[%c0_8, %c0_9] : memref<1x128xf32, #tpu.memory_space<vmem>>, vector<1x128xf32>
    %21 = vector.broadcast %20 : vector<1x128xf32> to vector<8x128xf32>
    %22 = arith.addf %19, %21 : vector<8x128xf32>
    %c0_10 = arith.constant 0 : index
    %c0_11 = arith.constant 0 : index
    %23 = vector.load %arg5[%c0_10, %c0_11] : memref<8x128xf32, #tpu.memory_space<vmem>>, vector<8x128xf32>
    tpu.vector_store %arg5[%c0_10, %c0_11], %22 {strides = array<i32>} : memref<8x128xf32, #tpu.memory_space<vmem>>, vector<8x128xf32>,
    return
  }
}

</mosaic_0001>

<bundles_post_ra>
// kernel: tpu_custom_call.1
= control target key start
LH: loop header
LB: loop body
LE: loop exit
PB: predicated region body
PF: predicated region fallthrough
CT: control target
= control target key end

     0   :  { %10 = vsyncpa [#allocation3], 0  ;;  %s226_s0 = inlined_call_operand.vmem [shape: f32[8,2], index: 0, kind: input, shape index: {}]   ;;  %s227_s1 = inlined_call_operand.vmem [shape: f32[2,32], index: 1, kind: input, shape index: {}]   ;;  %s228_s2 = inlined_call_operand.vmem [shape: f32[1,32], index: 2, kind: input, shape index: {}]   ;;  %s229_s3 = inlined_call_operand.hbm [shape: f32[32,128], index: 3, kind: input, shape index: {}]   ;;  %s230_s4 = inlined_call_operand.vmem [shape: f32[1,128], index: 4, kind: input, shape index: {}]   ;;  %s231_s5 = inlined_call_operand.hbm [shape: f32[8,128], index: 5, kind: output, shape index: {}]  }
   0x1   :  { %11 = vsyncpa [#allocation4], 0  ;;  %s22_s20 = sshll.u32 %s229_s3, 4  ;;  %s172_s21 = smov [#allocation2]   ;;  %s23_s20 = int_to_ptr.hbm [resolvable:$true] %s22_s20 }
   0x2   :  { %s24_s22 = sshll.u32 %s172_s21, 4  ;;  %s173_s23 = smov 128   ;;  %s25_s22 = int_to_ptr.vmem [resolvable:$true] %s24_s22 }
   0x3   :  { %s174_s24 = smov 8  }
   0x4   :  { %30 = dma.hbm_to_vmem [thread:$0]  %s23_s20, 512, %s25_s22, [#allocation3], %s173_s23, %s173_s23, %s174_s24  }
   0x5   :  { %168 = dma.done.wait [#allocation3], 512  }
   0x6   :  { %169 = vsyncadd [#allocation3], 4294966784  ;;  %v175_v0 = vmov 0   ;;  %v37_v1 = vld [vmem:[%s226_s0] sm:$0xff]  ;;  %v176_v2 = vmov 1   ;;  %v62_v3 = vld [vmem:[#allocation2 + $0x18] sm:$0xff] }
   0x7   :  { %116 = vset.pattern.permute.xlu0 %v175_v0  ;;  %83 = vmatpush.msra.mxu0 %v62_v3  ;;  %v61_v4 = vld [vmem:[#allocation2 + $0x10] sm:$0xff]  ;;  %v60_v5 = vld [vmem:[#allocation2 + $0x8] sm:$0xff]  ;;  %v59_v6 = vld [vmem:[#allocation2] sm:$0xff]  ;;  %vm67_vm0 = vcmask 261120   ;;  %s99_s9 = sshll.u32 %s231_s5, 4  ;;  %s100_s9 = int_to_ptr.hbm [resolvable:$true] %s99_s9 }
   0x8   :  { %42 = vperm.xlu0 %116, %v37_v1   ;;  %v38_v7 = vld [vmem:[%s227_s1] sm:$0x3]  ;;  %s177_s1 = smov [#allocation5]  }
   0x9   :  { %84 = vmatpush.msra.mxu0 %v61_v4  ;;  %v45_v9 = vperm.slane %v38_v7, 0  ;;  %v118_v10 = vld [vmem:[%s228_s2] ss:$0 sm:$0xff]  ;;  %v55_v12 = vperm.slane %v38_v7, 1  ;;  %s97_s6 = sshll.u32 %s177_s1, 4  ;;  %s98_s6 = int_to_ptr.vmem [resolvable:$true] %s97_s6 }
   0xa   :  { %v119_v18 = vld [vmem:[%s230_s4] ss:$0 sm:$0xff] }
   0xb   :  { %85 = vmatpush.msra.mxu0 %v60_v5 }
   0xd   :  { %86 = vmatpush.msra.mxu0 %v59_v6 }
  0x10   :  { %117 = vset.pattern.permute.xlu0 %v176_v2 }
  0x11   :  { %52 = vperm.xlu0 %117, %v37_v1  }
  0x7a   :  { %v43_v8 = vpop.permute.xlu0 %42 }
  0x7b   :  { %v46_v11 = vmul.f32 %v45_v9, %v43_v8 }
  0x7d   :  { %v50_v14 = vadd.f32 %v118_v10, %v46_v11 }
  0x83   :  { %v53_v13 = vpop.permute.xlu0 %52 }
  0x84   :  { %v56_v15 = vmul.f32 %v55_v12, %v53_v13 }
  0x86   :  { %v57_v16 = vadd.f32 %v56_v15, %v50_v14 }
  0x88   :  { %v58_v17 = vmax.f32 %v57_v16, 0.0 }
  0x8a   :  { %109 = vmatmul.msk.f32.vlgmr.msra.gmra.mxu0 %vm67_vm0, %v58_v17 }
 0x107   :  { %v88_v19 = vpop.f32.mrf.mxu0 }
 0x108   :  { %v89_v20 = vadd.f32 %v119_v18, %v88_v19 }
 0x10a   :  { %91 = vst [vmem:[#allocation5] sm:$0xff] %v89_v20 }
 0x10b   :  { %102 = dma.vmem_to_hbm [thread:$0]  %s98_s6, 128, %s100_s9, [#allocation4]  }
 0x10c   :  { %170 = dma.done.wait [#allocation4], 128  }
 0x10d   :  { %171 = vsyncadd [#allocation4], 4294967168 }
 0x10e   :  { %107 = vsyncpa [#allocation3], 1 }
 0x10f   :  { %108 = vsyncpa [#allocation4], 1 }

</bundles_post_ra>
